<compile_context>
chip_gen: v6e
topology: v6e:2x2x1
jax: 0.10.0
libtpu: 0.0.40
codegen_flags: <defaults>
</compile_context>

<pallas_src>
import functools

import numpy as np

import jax
import jax.numpy as jnp
from jax.experimental import pallas as pl
from jax.experimental.pallas import tpu as pltpu

_LEGACY_2PI = 3.1415926 * 2.0


def _thin_lens_kernel(prow_ref, pcol_ref, re_ref, im_ref, ore_ref, oim_ref,
                      *, row_tile):
    """Apply exp(1j*(phi_row + phi_col)) to one (TR, N) field tile.

    prow_ref: (N, 2) resident VMEM block, [:,0]=cos(phi), [:,1]=sin(phi).
    pcol_ref: (2, N) resident VMEM block, [0,:]=cos(phi), [1,:]=sin(phi).
    """
    r = pl.program_id(1)
    start = pl.multiple_of(r * row_tile, row_tile)
    rows = prow_ref[pl.ds(start, row_tile), :]        # (TR, 2)
    cr = rows[:, 0:1]                                 # (TR, 1) cos(phi_row)
    sr = rows[:, 1:2]                                 # (TR, 1) sin(phi_row)
    cc = pcol_ref[0:1, :]                             # (1, N)  cos(phi_col)
    sc = pcol_ref[1:2, :]                             # (1, N)  sin(phi_col)

    re = re_ref[...]                                  # (TR, N)
    im = im_ref[...]

    # Rotate by the row phase first, then by the column phase (angle
    # addition); only two (TR, N) temporaries are live at a time.
    a = re * cr - im * sr
    b = im * cr + re * sr
    ore_ref[...] = a * cc - b * sc
    oim_ref[...] = b * cc + a * sc


def _pick_row_tile(n, target_bytes=2 << 20, min_steps=4):
    """Largest multiple-of-8 row tile dividing n, <= ~2 MiB f32 block, and
    leaving at least `min_steps` row steps when possible."""
    if n % 8 != 0:
        return n                                       # full-extent block is legal
    cap = max(8, (target_bytes // (4 * n)) // 8 * 8)   # byte budget
    if n // min_steps >= 8:
        cap = min(cap, (n // min_steps) // 8 * 8)      # pipeline / megacore depth
    tr = min(n, cap)
    while tr >= 8:
        if n % tr == 0:
            return tr
        tr -= 8
    return n


@functools.partial(jax.jit, static_argnames=("row_tile",))
def _thin_lens_device(Fin, prow, pcol, *, row_tile):
    squeeze = Fin.ndim == 2
    if squeeze:
        Fin = Fin[None]
    B, N, _ = Fin.shape
    TR = row_tile

    re = jnp.real(Fin).astype(jnp.float32)
    im = jnp.imag(Fin).astype(jnp.float32)

    prow_spec = pl.BlockSpec((N, 2), lambda b, r: (0, 0))   # resident, no re-DMA
    pcol_spec = pl.BlockSpec((2, N), lambda b, r: (0, 0))   # resident, no re-DMA
    fld_spec = pl.BlockSpec((None, TR, N), lambda b, r: (b, r, 0))

    kernel = functools.partial(_thin_lens_kernel, row_tile=TR)

    ore, oim = pl.pallas_call(
        kernel,
        grid=(B, N // TR),
        in_specs=[prow_spec, pcol_spec, fld_spec, fld_spec],
        out_specs=[fld_spec, fld_spec],
        out_shape=(jax.ShapeDtypeStruct((B, N, N), jnp.float32),
                   jax.ShapeDtypeStruct((B, N, N), jnp.float32)),
        input_output_aliases={2: 0, 3: 1},       # re -> out_re, im -> out_im
        compiler_params=pltpu.CompilerParams(
            dimension_semantics=("parallel", "parallel"),
            vmem_limit_bytes=32 * 1024 * 1024),
    )(prow, pcol, re, im)

    Fout = jax.lax.complex(ore, oim)
    if squeeze:
        Fout = Fout[0]
    return Fout


class ThinLens:
    """JAX/Pallas port of the PyTorch ThinLens module (forward pass)."""

    def __init__(self, wavelength):
        self.wavelength = float(wavelength)
        self._phase_cache = {}

    def __call__(self, Fin, f, gridsize):
        return self.forward(Fin, f, gridsize)

    def _phase_vectors(self, N, f, gridsize):
        """Device-cached packed cos/sin of the separable 1-D quadratic phase."""
        key = (N, f, gridsize)
        hit = self._phase_cache.get(key)
        if hit is not None:
            return hit
        k = _LEGACY_2PI / self.wavelength
        dx = gridsize / N
        d = (np.arange(N, dtype=np.float64) - (N // 2)) * dx
        phi = (-k) * (d * d) / (2.0 * f)          # exact f64 range reduction
        c1 = np.cos(phi).astype(np.float32)
        s1 = np.sin(phi).astype(np.float32)
        prow = jnp.asarray(np.stack([c1, s1], axis=1))   # (N, 2)
        pcol = jnp.asarray(np.stack([c1, s1], axis=0))   # (2, N)
        self._phase_cache[key] = (prow, pcol)
        return prow, pcol

    def forward(self, Fin, f, gridsize, row_tile=None):
        # f / gridsize are concrete Python scalars, as in the PyTorch module.
        # TODO(synk): a traced focal length would require moving the 1-D phase
        # computation into the kernel (or into the jitted wrapper).
        f = float(f)
        gridsize = float(gridsize)

        N = Fin.shape[-1]
        assert Fin.shape[-2] == N, "ThinLens expects a square field"
        assert Fin.ndim in (2, 3)

        prow, pcol = self._phase_vectors(N, f, gridsize)
        TR = row_tile if row_tile is not None else _pick_row_tile(N)
        assert N % TR == 0 and (TR % 8 == 0 or TR == N), "bad row tile"
        return _thin_lens_device(Fin, prow, pcol, row_tile=TR)


def _reference(Fin, f, gridsize, wavelength):
    """float64 numpy reference mirroring the PyTorch code."""
    F = np.asarray(Fin).astype(np.complex128)
    N = F.shape[-1]
    dx = gridsize / N
    idx = (np.arange(N, dtype=np.float64) - (N // 2)) * dx
    yy, xx = np.meshgrid(idx, idx, indexing="ij")
    k = _LEGACY_2PI / wavelength
    fi = -k * (xx ** 2 + yy ** 2) / (2.0 * f)
    return F * np.exp(1j * fi)


if __name__ == "__main__":
    key = jax.random.PRNGKey(0)
    B, N = 2, 256
    wavelength = 1.064e-6      # 1064 nm laser
    f = 0.2                    # 200 mm focal length
    gridsize = 20e-3           # 20 mm grid  (max |phase| ~ 3e3 rad)

    kr, ki = jax.random.split(key)
    re = jax.random.normal(kr, (B, N, N), dtype=jnp.float32)
    im = jax.random.normal(ki, (B, N, N), dtype=jnp.float32)
    Fin = (re + 1j * im).astype(jnp.complex64)

    lens = ThinLens(wavelength)

    # Batched path (auto tile: TR=64 -> grid (2, 4), 8 pipelined steps).
    Fout = jax.block_until_ready(lens.forward(Fin, f, gridsize))
    ref = _reference(Fin, f, gridsize, wavelength)
    assert Fout.shape == Fin.shape and Fout.dtype == jnp.complex64
    err = np.max(np.abs(np.asarray(Fout).astype(np.complex128) - ref))
    assert err < 1e-4, f"batched max |err| = {err}"

    # Second call at the same (N, f, gridsize): hits the phase cache + jit cache.
    Fout_again = jax.block_until_ready(lens.forward(Fin, f, gridsize))
    err_again = np.max(np.abs(np.asarray(Fout_again).astype(np.complex128) - ref))
    assert err_again < 1e-4, f"cached-call max |err| = {err_again}"

    # Unbatched (N, N) path with a different focal length / grid.
    Fout2 = jax.block_until_ready(lens(Fin[0], 0.5, 10e-3))
    ref2 = _reference(Fin[0], 0.5, 10e-3, wavelength)
    err2 = np.max(np.abs(np.asarray(Fout2).astype(np.complex128) - ref2))
    assert Fout2.shape == (N, N) and err2 < 1e-4, f"unbatched max |err| = {err2}"

    print("KERNEL_OK")
</pallas_src>

<mosaic_0001>
module attributes {stable_mosaic.version = 11 : i64} {
  func.func @_thin_lens_kernel(%arg0: i32, %arg1: i32, %arg2: memref<256x2xf32, #tpu.memory_space<vmem>>, %arg3: memref<2x256xf32, #tpu.memory_space<vmem>>, %arg4: memref<1x64x256xf32, #tpu.memory_space<vmem>>, %arg5: memref<1x64x256xf32, #tpu.memory_space<vmem>>, %arg6: memref<1x64x256xf32, #tpu.memory_space<vmem>>, %arg7: memref<1x64x256xf32, #tpu.memory_space<vmem>>) attributes {dimension_semantics = [#tpu.dimension_semantics<parallel>, #tpu.dimension_semantics<parallel>], iteration_bounds = array<i64: 2, 4>, scalar_prefetch = 0 : i64, scratch_operands = 0 : i64, tpu.core_type = #tpu.core_type<tc>, window_params = [{pipeline_mode = #tpu.pipeline_mode<synchronous>, transform_indices = @transform_0, window_bounds = array<i64: 256, 2>}, {pipeline_mode = #tpu.pipeline_mode<synchronous>, transform_indices = @transform_1, window_bounds = array<i64: 2, 256>}, {transform_indices = @transform_2, window_bounds = array<i64: 1, 64, 256>}, {transform_indices = @transform_3, window_bounds = array<i64: 1, 64, 256>}, {transform_indices = @transform_4, window_bounds = array<i64: 1, 64, 256>}, {transform_indices = @transform_5, window_bounds = array<i64: 1, 64, 256>}]} {
    %c64_i32 = arith.constant 64 : i32
    %0 = arith.muli %arg1, %c64_i32 : i32
    %1 = tpu.assume_multiple %0, 64 : i32
    %2 = arith.index_cast %1 : i32 to index
    %c0 = arith.constant 0 : index
    %3 = vector.load %arg2[%2, %c0] : memref<256x2xf32, #tpu.memory_space<vmem>>, vector<64x2xf32>
    %4 = vector.extract_strided_slice %3 {offsets = [0, 0], sizes = [64, 1], strides = [1, 1]} : vector<64x2xf32> to vector<64x1xf32>
    %5 = vector.extract_strided_slice %3 {offsets = [0, 1], sizes = [64, 1], strides = [1, 1]} : vector<64x2xf32> to vector<64x1xf32>
    %c0_0 = arith.constant 0 : index
    %c0_1 = arith.constant 0 : index
    %6 = vector.load %arg3[%c0_0, %c0_1] : memref<2x256xf32, #tpu.memory_space<vmem>>, vector<1x256xf32>
    %c1 = arith.constant 1 : index
    %c0_2 = arith.constant 0 : index
    %7 = vector.load %arg3[%c1, %c0_2] : memref<2x256xf32, #tpu.memory_space<vmem>>, vector<1x256xf32>
    %c0_3 = arith.constant 0 : index
    %c0_4 = arith.constant 0 : index
    %c0_5 = arith.constant 0 : index
    %8 = vector.load %arg4[%c0_3, %c0_4, %c0_5] : memref<1x64x256xf32, #tpu.memory_space<vmem>>, vector<1x64x256xf32>
    %9 = vector.shape_cast %8 : vector<1x64x256xf32> to vector<64x256xf32>
    %c0_6 = arith.constant 0 : index
    %c0_7 = arith.constant 0 : index
    %c0_8 = arith.constant 0 : index
    %10 = vector.load %arg5[%c0_6, %c0_7, %c0_8] : memref<1x64x256xf32, #tpu.memory_space<vmem>>, vector<1x64x256xf32>
    %11 = vector.shape_cast %10 : vector<1x64x256xf32> to vector<64x256xf32>
    %12 = vector.broadcast %4 : vector<64x1xf32> to vector<64x256xf32>
    %13 = arith.mulf %9, %12 : vector<64x256xf32>
    %14 = vector.broadcast %5 : vector<64x1xf32> to vector<64x256xf32>
    %15 = arith.mulf %11, %14 : vector<64x256xf32>
    %16 = arith.subf %13, %15 : vector<64x256xf32>
    %17 = vector.broadcast %4 : vector<64x1xf32> to vector<64x256xf32>
    %18 = arith.mulf %11, %17 : vector<64x256xf32>
    %19 = vector.broadcast %5 : vector<64x1xf32> to vector<64x256xf32>
    %20 = arith.mulf %9, %19 : vector<64x256xf32>
    %21 = arith.addf %18, %20 : vector<64x256xf32>
    %22 = vector.broadcast %6 : vector<1x256xf32> to vector<64x256xf32>
    %23 = arith.mulf %16, %22 : vector<64x256xf32>
    %24 = vector.broadcast %7 : vector<1x256xf32> to vector<64x256xf32>
    %25 = arith.mulf %21, %24 : vector<64x256xf32>
    %26 = arith.subf %23, %25 : vector<64x256xf32>
    %c0_9 = arith.constant 0 : index
    %c0_10 = arith.constant 0 : index
    %c0_11 = arith.constant 0 : index
    %27 = vector.load %arg6[%c0_9, %c0_10, %c0_11] : memref<1x64x256xf32, #tpu.memory_space<vmem>>, vector<1x64x256xf32>
    %28 = vector.shape_cast %27 : vector<1x64x256xf32> to vector<64x256xf32>
    %29 = vector.shape_cast %26 : vector<64x256xf32> to vector<1x64x256xf32>
    tpu.vector_store %arg6[%c0_9, %c0_10, %c0_11], %29 {strides = array<i32>} : memref<1x64x256xf32, #tpu.memory_space<vmem>>, vector<1x64x256xf32>,
    %30 = vector.broadcast %6 : vector<1x256xf32> to vector<64x256xf32>
    %31 = arith.mulf %21, %30 : vector<64x256xf32>
    %32 = vector.broadcast %7 : vector<1x256xf32> to vector<64x256xf32>
    %33 = arith.mulf %16, %32 : vector<64x256xf32>
    %34 = arith.addf %31, %33 : vector<64x256xf32>
    %c0_12 = arith.constant 0 : index
    %c0_13 = arith.constant 0 : index
    %c0_14 = arith.constant 0 : index
    %35 = vector.load %arg7[%c0_12, %c0_13, %c0_14] : memref<1x64x256xf32, #tpu.memory_space<vmem>>, vector<1x64x256xf32>
    %36 = vector.shape_cast %35 : vector<1x64x256xf32> to vector<64x256xf32>
    %37 = vector.shape_cast %34 : vector<64x256xf32> to vector<1x64x256xf32>
    tpu.vector_store %arg7[%c0_12, %c0_13, %c0_14], %37 {strides = array<i32>} : memref<1x64x256xf32, #tpu.memory_space<vmem>>, vector<1x64x256xf32>,
    return
  }
  func.func @transform_0(%arg0: i32, %arg1: i32) -> (i32, i32) {
    %c0_i32 = arith.constant 0 : i32
    %c0_i32_0 = arith.constant 0 : i32
    %c0_i32_1 = arith.constant 0 : i32
    return %c0_i32, %c0_i32_0 : i32, i32
  }
  func.func @transform_1(%arg0: i32, %arg1: i32) -> (i32, i32) {
    %c0_i32 = arith.constant 0 : i32
    %c0_i32_0 = arith.constant 0 : i32
    %c0_i32_1 = arith.constant 0 : i32
    return %c0_i32, %c0_i32_0 : i32, i32
  }
  func.func @transform_2(%arg0: i32, %arg1: i32) -> (i32, i32, i32) {
    %c0_i32 = arith.constant 0 : i32
    %c0_i32_0 = arith.constant 0 : i32
    return %arg0, %arg1, %c0_i32 : i32, i32, i32
  }
  func.func @transform_3(%arg0: i32, %arg1: i32) -> (i32, i32, i32) {
    %c0_i32 = arith.constant 0 : i32
    %c0_i32_0 = arith.constant 0 : i32
    return %arg0, %arg1, %c0_i32 : i32, i32, i32
  }
  func.func @transform_4(%arg0: i32, %arg1: i32) -> (i32, i32, i32) {
    %c0_i32 = arith.constant 0 : i32
    %c0_i32_0 = arith.constant 0 : i32
    return %arg0, %arg1, %c0_i32 : i32, i32, i32
  }
  func.func @transform_5(%arg0: i32, %arg1: i32) -> (i32, i32, i32) {
    %c0_i32 = arith.constant 0 : i32
    %c0_i32_0 = arith.constant 0 : i32
    return %arg0, %arg1, %c0_i32 : i32, i32, i32
  }
}

</mosaic_0001>

<bundles_post_ra>
// kernel: custom-call
= control target key start
LH: loop header
LB: loop body
LE: loop exit
PB: predicated region body
PF: predicated region fallthrough
CT: control target
= control target key end

     0   :  { %2 = vsyncpa [#allocation0], 0  ;;  %s47_s0 = inlined_call_operand.hbm [shape: c64[2,256,256], index: 0, kind: input, shape index: {}]   ;;  %s48_s1 = inlined_call_operand.vmem [shape: f32[2,256,256], index: 1, kind: output, shape index: {}]  }
   0x1   :  { %s3_s8 = sshll.u32 %s48_s1, 4  ;;  %s4_s8 = int_to_ptr.vmem [resolvable:$true] %s3_s8 }
   0x2   :  { %s17_s9 = scalar_lea.vmem %s4_s8, 16384  ;;  %p22_p1 = scmp.lt.s32.totalorder %s4_s8, %s4_s8 }
   0x3   :  { %p18_p0 = scmp.ne.s32.totalorder %s4_s8, %s17_s9  ;;  %p23_p2 = scmp.lt.s32.totalorder %s17_s9, %s17_s9 }
   0x5   :  { %p24_p3 = por %p23_p2, %p22_p1 }
   0x7   :  { %p25_p4 = pnand %p24_p3, %p18_p0 }
   0x9   :  { %28 = shalt.err (!%p25_p4)  }
   0xa   :  { %6 = dma.hbm_to_vmem [thread:$0]  %s47_s0, 16384, %s4_s8, [#allocation0] }
   0xb   :  { %29 = dma.done.wait [#allocation0], 16384  }
   0xc   :  { %30 = vsyncadd [#allocation0], 4294950912 }
   0xd   :  { %8 = vsyncpa [#allocation0], 1 }

// kernel: custom-call.1
= control target key start
LH: loop header
LB: loop body
LE: loop exit
PB: predicated region body
PF: predicated region fallthrough
CT: control target
= control target key end

     0   :  { %s51_s0 = inlined_call_operand.hbm [shape: c64[2,256,256], index: 0, kind: input, shape index: {}]   ;;  %s52_s1 = inlined_call_operand.vmem [shape: f32[2,256,256], index: 1, kind: output, shape index: {}]  }
   0x1   :  { %s2_s8 = scalar_lea.hbm %s51_s0, 16384 }
   0x2   :  { %3 = vsyncpa [#allocation0], 0  ;;  %s4_s11 = sshll.u32 %s52_s1, 4  ;;  %s5_s11 = int_to_ptr.vmem [resolvable:$true] %s4_s11 }
   0x3   :  { %s20_s12 = scalar_lea.vmem %s5_s11, 16384  ;;  %p25_p1 = scmp.lt.s32.totalorder %s5_s11, %s5_s11 }
   0x4   :  { %p21_p0 = scmp.ne.s32.totalorder %s5_s11, %s20_s12  ;;  %p26_p2 = scmp.lt.s32.totalorder %s20_s12, %s20_s12 }
   0x6   :  { %p27_p3 = por %p26_p2, %p25_p1 }
   0x8   :  { %p28_p4 = pnand %p27_p3, %p21_p0 }
   0xa   :  { %31 = shalt.err (!%p28_p4)  }
   0xb   :  { %7 = dma.hbm_to_vmem [thread:$0]  %s2_s8, 16384, %s5_s11, [#allocation0] }
   0xc   :  { %33 = dma.done.wait [#allocation0], 16384  }
   0xd   :  { %34 = vsyncadd [#allocation0], 4294950912 }
   0xe   :  { %9 = vsyncpa [#allocation0], 1 }

// kernel: custom-call.2
= control target key start
LH: loop header
LB: loop body
LE: loop exit
PB: predicated region body
PF: predicated region fallthrough
CT: control target
= control target key end

     0   :  { %s92_s0 = inlined_call_operand.vmem [shape: f32[2,256,256], index: 0, kind: input, shape index: {}]   ;;  %s93_s1 = inlined_call_operand.vmem [shape: f32[2,256,256], index: 1, kind: input, shape index: {}]   ;;  %s94_s2 = inlined_call_operand.hbm [shape: c64[2,256,256], index: 2, kind: output, shape index: {}]  }
   0x1   :  { %s3_s11 = scalar_lea.hbm %s94_s2, 16384 }
   0x2   :  { %4 = vsyncpa [#allocation0], 0  ;;  %s5_s14 = sshll.u32 %s92_s0, 4  ;;  %s6_s14 = int_to_ptr.vmem [resolvable:$true] %s5_s14 }
   0x3   :  { %s18_s15 = scalar_lea.vmem %s6_s14, 16384  ;;  %p23_p1 = scmp.lt.s32.totalorder %s6_s14, %s6_s14 }
   0x4   :  { %p19_p0 = scmp.ne.s32.totalorder %s6_s14, %s18_s15  ;;  %p24_p2 = scmp.lt.s32.totalorder %s18_s15, %s18_s15 }
   0x6   :  { %p25_p3 = por %p24_p2, %p23_p1 }
   0x8   :  { %p26_p4 = pnand %p25_p3, %p19_p0 }
   0xa   :  { %29 = shalt.err (!%p26_p4)  }
   0xb   :  { %8 = dma.vmem_to_hbm [thread:$0]  %s6_s14, 16384, %s94_s2, [#allocation0] }
   0xc   :  { %61 = dma.done.wait [#allocation0], 16384  }
   0xd   :  { %62 = vsyncadd [#allocation0], 4294950912 }
   0xe   :  { %10 = vsyncpa [#allocation0], 1 }
   0xf   :  { %11 = vsyncpa [#allocation1], 0  ;;  %s12_s0 = sshll.u32 %s93_s1, 4  ;;  %s13_s0 = int_to_ptr.vmem [resolvable:$true] %s12_s0 }
  0x10   :  { %s38_s20 = scalar_lea.vmem %s13_s0, 16384  ;;  %p43_p6 = scmp.lt.s32.totalorder %s13_s0, %s13_s0 }
  0x11   :  { %p39_p5 = scmp.ne.s32.totalorder %s13_s0, %s38_s20  ;;  %p44_p7 = scmp.lt.s32.totalorder %s38_s20, %s38_s20 }
  0x13   :  { %p45_p8 = por %p44_p7, %p43_p6 }
  0x15   :  { %p46_p9 = pnand %p45_p8, %p39_p5 }
  0x17   :  { %49 = shalt.err (!%p46_p9)  }
  0x18   :  { %15 = dma.vmem_to_hbm [thread:$0]  %s13_s0, 16384, %s3_s11, [#allocation1] }
  0x19   :  { %63 = dma.done.wait [#allocation1], 16384  }
  0x1a   :  { %64 = vsyncadd [#allocation1], 4294950912 }
  0x1b   :  { %17 = vsyncpa [#allocation1], 1 }

// kernel: _thin_lens_device.1
= control target key start
LH: loop header
LB: loop body
LE: loop exit
PB: predicated region body
PF: predicated region fallthrough
CT: control target
= control target key end

     0   :  { %s1018_s18 = smov 0   ;;  %s1020_s19 = smov 0   ;;  %s1434_s0 = inlined_call_operand.vmem [shape: f32[256,2], index: 0, kind: input, shape index: {}]   ;;  %s1435_s1 = inlined_call_operand.vmem [shape: f32[2,256], index: 1, kind: input, shape index: {}]   ;;  %s1436_s2 = inlined_call_operand.vmem [shape: f32[2,256,256], index: 2, kind: input, shape index: {}, may-alias: {2,4}]   ;;  %s1437_s3 = inlined_call_operand.vmem [shape: f32[2,256,256], index: 3, kind: input, shape index: {}, may-alias: {3,5}]   ;;  %s1438_s4 = inlined_call_operand.vmem [shape: f32[2,256,256], index: 4, kind: output, shape index: {0}, may-alias: {2,4}]   ;;  %s1439_s5 = inlined_call_operand.vmem [shape: f32[2,256,256], index: 5, kind: output, shape index: {1}, may-alias: {3,5}]  }
   0x1   :  { %s1022_s20 = smov 0   ;;  %s1024_s21 = smov 0  }
   0x2   :  { %s1026_s22 = smov 0  }
   0x3 LB: > { %s25_s23 = sadd.s32 1, %s976_s20  ;;  %s28_s24 = sadd.s32 1, %s980_s21  ;;  %s984_s22 = sphi %s1026_s22, %s16_s22   ;;  %s980_s21 = sphi %s1024_s21, %s1488_s21   ;;  %s976_s20 = sphi %s1022_s20, %s1487_s20   ;;  %s972_s19 = sphi %s1020_s19, %s1486_s19   ;;  %s968_s18 = sphi %s1018_s18, %s1485_s18  }
   0x4   : > { %p26_p0 = scmp.ge.s32.totalorder %s25_s23, 4  ;;  %p879_p1 = scmp.ge.s32.totalorder %s984_s22, 1 }
   0x5   : > { %p232_p2 = scmp.lt.s32.totalorder %s984_s22, 9 }
   0x6   : > { %s1490_s23 = smov (%p26_p0, %s25_s23), 0  ;;  %s1492_s24 = smov (!%p26_p0, %s28_s24), %s980_s21 }
   0x7   : > { %p233_p3 = pnand %p879_p1, %p232_p2  ;;  %p30_p4 = scmp.ge.s32.totalorder %s1492_s24, 2 }
   0x9   : > { %s1494_s24 = smov (%p30_p4, %s1492_s24), 0  ;;  %236 = sbr.rel (%p233_p3) target bundleno = 204 (0xcc), region = 36 }
   0xe   : > { %s896_s25 = sshll.u32 %s968_s18, 6  ;;  %v986_v0 = vmov 0   ;;  %v987_v9 = vmov 1   ;;  %s880_s29 = sshll.u32 %s968_s18, 3  ;;  %v548_v10 = vlaneseq }
   0xf   : > { %943 = vset.pattern.permute.xlu1 %v986_v0  ;;  %942 = vset.pattern.permute.xlu0 %v986_v0  ;;  %s335_s28 = scalar_lea.vmem %s1434_s0, %s896_s25  ;;  %p291_p5 = scmp.lt.s32.totalorder %s972_s19, 1  ;;  %v344_v26 = vld [vmem:[%s1435_s1] ss:$2 sm:$0x3] }
  0x10   : > { %v338_v1 = vld [vmem:[%s335_s28 + $0x10] sm:$0xff]  ;;  %v336_v2 = vld [vmem:[%s335_s28] sm:$0xff]  ;;  %v339_v3 = vld [vmem:[%s335_s28 + $0x18] sm:$0xff]  ;;  %p293_p6 = scmp.lt.s32.totalorder %s880_s29, 31  ;;  %v549_v13 = vshrl.u32 %v548_v10, 7 }
  0x11   : > { %391 = vperm.xlu1 %943, %v338_v1   ;;  %381 = vperm.xlu0 %942, %v336_v2   ;;  %v337_v4 = vld [vmem:[%s335_s28 + $0x8] sm:$0xff]  ;;  %v340_v6 = vld [vmem:[%s335_s28 + $0x20] sm:$0xff]  ;;  %v343_v7 = vld [vmem:[%s335_s28 + $0x38] sm:$0xff]  ;;  %s1496_s19 = smov (!%p291_p5, %s972_s19), 1 }
  0x12   : > { %v341_v5 = vld [vmem:[%s335_s28 + $0x28] sm:$0xff]  ;;  %v342_v8 = vld [vmem:[%s335_s28 + $0x30] sm:$0xff]  ;;  %s1498_s29 = smov (!%p293_p6, %s880_s29), 31  ;;  %s882_s6 = sshll.u32 %s1496_s19, 6  ;;  %v550_v20 = vsub.s32 0, %v549_v13  ;;  %v554_v21 = vsub.s32 1, %v549_v13 }
  0x13   : > { %s881_s30 = sshll.u32 %s1498_s29, 1  ;;  %v897_v27 = vld [vmem:[%s1435_s1 + $0x1] ss:$2 sm:$0x3] }
  0x14   : > { %s297_s7 = sadd.s32 %s882_s6, %s881_s30  ;;  %v1126_v39 = vrot.slane %v344_v26, %v550_v20  ;;  %v1128_v40 = vrot.slane %v344_v26, %v554_v21  ;;  %v1130_v41 = vrot.slane %v897_v27, %v550_v20  ;;  %v1132_v42 = vrot.slane %v897_v27, %v554_v21 }
  0x15   : > { %396 = vperm.xlu1 %943, %v339_v3   ;;  %386 = vperm.xlu0 %942, %v337_v4   ;;  %s1059_s8 = sshll.u32 %s297_s7, 3 }
  0x16   : > { %s1065_s11 = scalar_lea.vmem %s1436_s2, %s1059_s8  ;;  %s1071_s14 = scalar_lea.vmem %s1437_s3, %s1059_s8 }
  0x17   : > { %v1074_v16 = vld [vmem:[%s1065_s11 + $0x20] sm:$0xff]  ;;  %v1077_v17 = vld [vmem:[%s1065_s11 + $0x28] sm:$0xff]  ;;  %v1104_v28 = vld [vmem:[%s1065_s11 + $0x30] sm:$0xff]  ;;  %s1271_s26 = scalar_lea.vmem %s1438_s4, %s1059_s8  ;;  %s1281_s29 = scalar_lea.vmem %s1439_s5, %s1059_s8 }
  0x18   : > { %v1080_v18 = vld [vmem:[%s1071_s14 + $0x20] sm:$0xff]  ;;  %v1083_v19 = vld [vmem:[%s1071_s14 + $0x28] sm:$0xff]  ;;  %v1107_v29 = vld [vmem:[%s1065_s11 + $0x38] sm:$0xff] }
  0x19   : > { %406 = vperm.xlu1 %943, %v341_v5   ;;  %401 = vperm.xlu0 %942, %v340_v6   ;;  %v1086_v22 = vld [vmem:[%s1065_s11] sm:$0xff]  ;;  %v1089_v23 = vld [vmem:[%s1065_s11 + $0x8] sm:$0xff]  ;;  %v1110_v30 = vld [vmem:[%s1071_s14 + $0x30] sm:$0xff] }
  0x1a   : > { %v1092_v24 = vld [vmem:[%s1071_s14] sm:$0xff]  ;;  %v1095_v25 = vld [vmem:[%s1071_s14 + $0x8] sm:$0xff]  ;;  %v1113_v31 = vld [vmem:[%s1071_s14 + $0x38] sm:$0xff] }
  0x1b   : > { %v1116_v32 = vld [vmem:[%s1065_s11 + $0x10] sm:$0xff]  ;;  %v1119_v33 = vld [vmem:[%s1065_s11 + $0x18] sm:$0xff]  ;;  %v1160_v54 = vld [vmem:[%s1065_s11 + $0x40] sm:$0xff] }
  0x1c   : > { %v365_v36 = vld [vmem:[%s1071_s14 + $0x10] sm:$0xff]  ;;  %v366_v37 = vld [vmem:[%s1071_s14 + $0x18] sm:$0xff]  ;;  %v1163_v55 = vld [vmem:[%s1065_s11 + $0x48] sm:$0xff] }
  0x1d   : > { %416 = vperm.xlu1 %943, %v343_v7   ;;  %411 = vperm.xlu0 %942, %v342_v8   ;;  %v1124_v38 = vld [vmem:[%s1065_s11 + $0x50] sm:$0xff]  ;;  %v1147_v47 = vld [vmem:[%s1065_s11 + $0x58] sm:$0xff]  ;;  %v1166_v56 = vld [vmem:[%s1071_s14 + $0x40] sm:$0xff] }
  0x1e   : > { %1447 = vst [vmem:[#allocation2_spill] sm:$0xff] %v1147_v47  ;;  %v1150_v48 = vld [vmem:[%s1071_s14 + $0x50] sm:$0xff]  ;;  %v1153_v49 = vld [vmem:[%s1071_s14 + $0x58] sm:$0xff]  ;;  %v1181_v61 = vld [vmem:[%s1071_s14 + $0x48] sm:$0xff] }
  0x1f   : > { %v1184_v63 = vld [vmem:[%s1065_s11 + $0x70] sm:$0xff]  ;;  %v1187_v0 = vld [vmem:[%s1065_s11 + $0x78] sm:$0xff]  ;;  %v1213_v13 = vld [vmem:[%s1065_s11 + $0x68] sm:$0xff] }
  0x20   : > { %1448 = vst [vmem:[#allocation3_spill] sm:$0xff] %v1184_v63  ;;  %1449 = vst [vmem:[#allocation4_spill] sm:$0xff] %v1187_v0 }
  0x21   : > { %945 = vset.pattern.permute.xlu1 %v987_v9  ;;  %944 = vset.pattern.permute.xlu0 %v987_v9  ;;  %1457 = vst [vmem:[#allocation12_spill] sm:$0xff] %v1213_v13 }
  0x22   : > { %440 = vperm.xlu1 %945, %v337_v4   ;;  %436 = vperm.xlu0 %944, %v336_v2  }
  0x26   : > { %444 = vperm.xlu1 %945, %v338_v1   ;;  %448 = vperm.xlu0 %944, %v339_v3  }
  0x2a   : > { %452 = vperm.xlu1 %945, %v340_v6   ;;  %456 = vperm.xlu0 %944, %v341_v5   ;;  %v1192_v6 = vld [vmem:[%s1071_s14 + $0x70] sm:$0xff] }
  0x2b   : > { %1450 = vst [vmem:[#allocation5_spill] sm:$0xff] %v1192_v6 }
  0x2e   : > { %460 = vperm.xlu1 %945, %v342_v8   ;;  %464 = vperm.xlu0 %944, %v343_v7   ;;  %v1195_v7 = vld [vmem:[%s1071_s14 + $0x78] sm:$0xff]  ;;  %v1198_v8 = vld [vmem:[%s1065_s11 + $0x60] sm:$0xff] }
  0x2f   : > { %1451 = vst [vmem:[#allocation6_spill] sm:$0xff] %v1195_v7  ;;  %1452 = vst [vmem:[#allocation7_spill] sm:$0xff] %v1198_v8 }
  0x8c   : > { %v392_v11 = vpop.permute.xlu1 %391  ;;  %v382_v12 = vpop.permute.xlu0 %381 }
  0x8d   : > { %v1135_v43 = vmul.f32 %v392_v11, %v1074_v16  ;;  %v1138_v44 = vmul.f32 %v392_v11, %v1077_v17  ;;  %v1141_v45 = vmul.f32 %v392_v11, %v1080_v18  ;;  %v1144_v46 = vmul.f32 %v392_v11, %v1083_v19 }
  0x8e   : > { %v419_v50 = vmul.f32 %v382_v12, %v1086_v22  ;;  %v420_v51 = vmul.f32 %v382_v12, %v1089_v23  ;;  %v499_v52 = vmul.f32 %v382_v12, %v1092_v24  ;;  %v500_v53 = vmul.f32 %v382_v12, %v1095_v25 }
  0x90   : > { %v397_v14 = vpop.permute.xlu1 %396  ;;  %v387_v15 = vpop.permute.xlu0 %386 }
  0x91   : > { %v1169_v57 = vmul.f32 %v397_v14, %v1104_v28  ;;  %v1172_v58 = vmul.f32 %v397_v14, %v1107_v29  ;;  %v1175_v59 = vmul.f32 %v397_v14, %v1110_v30  ;;  %v1178_v60 = vmul.f32 %v397_v14, %v1113_v31  ;;  %v1216_v14 = vld [vmem:[%s1071_s14 + $0x60] sm:$0xff] }
  0x92   : > { %v421_v2 = vmul.f32 %v387_v15, %v1116_v32  ;;  %v422_v3 = vmul.f32 %v387_v15, %v1119_v33  ;;  %v501_v4 = vmul.f32 %v387_v15, %v365_v36  ;;  %v502_v5 = vmul.f32 %v387_v15, %v366_v37  ;;  %v1219_v15 = vld [vmem:[%s1071_s14 + $0x68] sm:$0xff] }
  0x94   : > { %v407_v34 = vpop.permute.xlu1 %406  ;;  %v402_v35 = vpop.permute.xlu0 %401 }
  0x95   : > { %v1201_v9 = vmul.f32 %v407_v34, %v1124_v38  ;;  %v1204_v10 = vmul.f32 %v407_v34, %v1147_v47  ;;  %v1207_v11 = vmul.f32 %v407_v34, %v1150_v48  ;;  %v1210_v12 = vmul.f32 %v407_v34, %v1153_v49 }
  0x96   : > { %v1222_v20 = vmul.f32 %v402_v35, %v1160_v54  ;;  %v1225_v21 = vmul.f32 %v402_v35, %v1163_v55  ;;  %v1228_v26 = vmul.f32 %v402_v35, %v1166_v56  ;;  %v1231_v27 = vmul.f32 %v402_v35, %v1181_v61 }
  0x97   : > { %1453 = vst [vmem:[#allocation8_spill] sm:$0xff] %v1201_v9  ;;  %1454 = vst [vmem:[#allocation9_spill] sm:$0xff] %v1204_v10 }
  0x98   : > { %v417_v62 = vpop.permute.xlu1 %416  ;;  %v412_v1 = vpop.permute.xlu0 %411  ;;  %1455 = vst [vmem:[#allocation10_spill] sm:$0xff] %v1207_v11  ;;  %1456 = vst [vmem:[#allocation11_spill] sm:$0xff] %v1210_v12 }
  0x99   : > { %v1234_v34 = vmul.f32 %v417_v62, %v1184_v63  ;;  %v1237_v12 = vmul.f32 %v417_v62, %v1187_v0  ;;  %v1240_v11 = vmul.f32 %v417_v62, %v1192_v6  ;;  %v1243_v10 = vmul.f32 %v417_v62, %v1195_v7 }
  0x9a   : > { %v1246_v9 = vmul.f32 %v412_v1, %v1198_v8  ;;  %v1249_v47 = vmul.f32 %v412_v1, %v1213_v13  ;;  %v1252_v35 = vmul.f32 %v412_v1, %v1216_v14 }
  0x9b   : > { %1458 = vst [vmem:[#allocation13_spill] sm:$0xff] %v1234_v34  ;;  %1459 = vst [vmem:[#allocation14_spill] sm:$0xff] %v1237_v12  ;;  %v1255_v34 = vmul.f32 %v412_v1, %v1219_v15 }
  0x9c   : > { %1460 = vst [vmem:[#allocation15_spill] sm:$0xff] %v1240_v11  ;;  %1461 = vst [vmem:[#allocation16_spill] sm:$0xff] %v1243_v10 }
  0x9d   : > { %1462 = vst [vmem:[#allocation17_spill] sm:$0xff] %v1246_v9  ;;  %1463 = vst [vmem:[#allocation18_spill] sm:$0xff] %v1249_v47  ;;  %v441_v0 = vpop.permute.xlu1 %440  ;;  %v437_v12 = vpop.permute.xlu0 %436 }
  0x9e   : > { %1464 = vst [vmem:[#allocation19_spill] sm:$0xff] %v1252_v35  ;;  %1465 = vst [vmem:[#allocation20_spill] sm:$0xff] %v1255_v34  ;;  %v469_v63 = vmul.f32 %v441_v0, %v365_v36  ;;  %v470_v6 = vmul.f32 %v441_v0, %v366_v37  ;;  %v517_v11 = vmul.f32 %v441_v0, %v1116_v32 }
  0x9f   : > { %v518_v62 = vmul.f32 %v441_v0, %v1119_v33  ;;  %v467_v10 = vmul.f32 %v437_v12, %v1092_v24  ;;  %v468_v7 = vmul.f32 %v437_v12, %v1095_v25  ;;  %v515_v47 = vmul.f32 %v437_v12, %v1086_v22 }
  0xa0   : > { %v516_v35 = vmul.f32 %v437_v12, %v1089_v23  ;;  %v485_v9 = vsub.f32 %v421_v2, %v469_v63  ;;  %v486_v1 = vsub.f32 %v422_v3, %v470_v6  ;;  %v533_v34 = vadd.f32 %v517_v11, %v501_v4 }
  0xa1   : > { %v534_v13 = vadd.f32 %v518_v62, %v502_v5  ;;  %v483_v36 = vsub.f32 %v419_v50, %v467_v10  ;;  %v484_v37 = vsub.f32 %v420_v51, %v468_v7  ;;  %v531_v8 = vadd.f32 %v515_v47, %v499_v52  ;;  %v445_v2 = vpop.permute.xlu1 %444  ;;  %v449_v12 = vpop.permute.xlu0 %448 }
  0xa2   : > { %v532_v32 = vadd.f32 %v516_v35, %v500_v53  ;;  %v560_v33 = vmul.f32 %v1126_v39, %v485_v9  ;;  %v561_v24 = vmul.f32 %v1128_v40, %v486_v1  ;;  %v587_v0 = vmul.f32 %v1130_v41, %v533_v34 }
  0xa3   : > { %v588_v25 = vmul.f32 %v1132_v42, %v534_v13  ;;  %v635_v22 = vmul.f32 %v1126_v39, %v533_v34  ;;  %v636_v23 = vmul.f32 %v1128_v40, %v534_v13  ;;  %v651_v47 = vmul.f32 %v1130_v41, %v485_v9 }
  0xa4   : > { %v652_v50 = vmul.f32 %v1132_v42, %v486_v1  ;;  %v603_v51 = vsub.f32 %v560_v33, %v587_v0  ;;  %v558_v53 = vmul.f32 %v1126_v39, %v483_v36  ;;  %v559_v63 = vmul.f32 %v1128_v40, %v484_v37 }
  0xa5   : > { %v604_v52 = vsub.f32 %v561_v24, %v588_v25  ;;  %v667_v3 = vadd.f32 %v651_v47, %v635_v22  ;;  %v585_v5 = vmul.f32 %v1130_v41, %v531_v8  ;;  %v586_v6 = vmul.f32 %v1132_v42, %v532_v32 }
  0xa6   : > { %v668_v4 = vadd.f32 %v652_v50, %v636_v23  ;;  %619 = vst [vmem:[%s1271_s26 + $0x10] sm:$0xff] %v603_v51  ;;  %v633_v7 = vmul.f32 %v1126_v39, %v531_v8  ;;  %v634_v9 = vmul.f32 %v1128_v40, %v532_v32  ;;  %v649_v10 = vmul.f32 %v1130_v41, %v483_v36 }
  0xa7   : > { %620 = vst [vmem:[%s1271_s26 + $0x18] sm:$0xff] %v604_v52  ;;  %v650_v11 = vmul.f32 %v1132_v42, %v484_v37  ;;  %683 = vst [vmem:[%s1281_s29 + $0x10] sm:$0xff] %v667_v3  ;;  %v601_v13 = vsub.f32 %v558_v53, %v585_v5  ;;  %v602_v34 = vsub.f32 %v559_v63, %v586_v6  ;;  %v453_v63 = vpop.permute.xlu1 %452  ;;  %v457_v6 = vpop.permute.xlu0 %456 }
  0xa8   : > { %684 = vst [vmem:[%s1281_s29 + $0x18] sm:$0xff] %v668_v4  ;;  %v471_v35 = vmul.f32 %v445_v2, %v1080_v18  ;;  %v472_v62 = vmul.f32 %v445_v2, %v1083_v19  ;;  %v665_v1 = vadd.f32 %v649_v10, %v633_v7  ;;  %v519_v33 = vmul.f32 %v445_v2, %v1074_v16 }
  0xa9   : > { %v666_v8 = vadd.f32 %v650_v11, %v634_v9  ;;  %v520_v32 = vmul.f32 %v445_v2, %v1077_v17  ;;  %617 = vst [vmem:[%s1271_s26] sm:$0xff] %v601_v13  ;;  %618 = vst [vmem:[%s1271_s26 + $0x8] sm:$0xff] %v602_v34  ;;  %v473_v24 = vmul.f32 %v449_v12, %v1110_v30 }
  0xaa   : > { %v487_v36 = vsub.f32 %v1135_v43, %v471_v35  ;;  %v488_v37 = vsub.f32 %v1138_v44, %v472_v62  ;;  %v474_v0 = vmul.f32 %v449_v12, %v1113_v31  ;;  %681 = vst [vmem:[%s1281_s29] sm:$0xff] %v665_v1  ;;  %v535_v18 = vadd.f32 %v519_v33, %v1141_v45 }
  0xab   : > { %682 = vst [vmem:[%s1281_s29 + $0x8] sm:$0xff] %v666_v8  ;;  %v536_v19 = vadd.f32 %v520_v32, %v1144_v46  ;;  %v521_v16 = vmul.f32 %v449_v12, %v1104_v28  ;;  %v522_v17 = vmul.f32 %v449_v12, %v1107_v29  ;;  %v489_v29 = vsub.f32 %v1169_v57, %v473_v24  ;;  %v1466_v32 = vld [vmem:[#allocation2_spill] sm:$0xff] }
  0xac   : > { %v562_v25 = vmul.f32 %v1126_v39, %v487_v36  ;;  %v563_v43 = vmul.f32 %v1128_v40, %v488_v37  ;;  %v653_v44 = vmul.f32 %v1130_v41, %v487_v36  ;;  %v654_v30 = vmul.f32 %v1132_v42, %v488_v37 }
  0xad   : > { %v589_v31 = vmul.f32 %v1130_v41, %v535_v18  ;;  %v590_v22 = vmul.f32 %v1132_v42, %v536_v19  ;;  %v637_v45 = vmul.f32 %v1126_v39, %v535_v18  ;;  %v638_v28 = vmul.f32 %v1128_v40, %v536_v19  ;;  %v1469_v19 = vld [vmem:[#allocation10_spill] sm:$0xff] }
  0xae   : > { %v490_v46 = vsub.f32 %v1172_v58, %v474_v0  ;;  %v537_v23 = vadd.f32 %v521_v16, %v1175_v59  ;;  %v538_v47 = vadd.f32 %v522_v17, %v1178_v60  ;;  %v564_v2 = vmul.f32 %v1126_v39, %v489_v29  ;;  %v1468_v0 = vld [vmem:[#allocation9_spill] sm:$0xff]  ;;  %v1470_v17 = vld [vmem:[#allocation11_spill] sm:$0xff] }
  0xaf   : > { %v605_v50 = vsub.f32 %v562_v25, %v589_v31  ;;  %v606_v51 = vsub.f32 %v563_v43, %v590_v22  ;;  %v669_v52 = vadd.f32 %v653_v44, %v637_v45  ;;  %v670_v53 = vadd.f32 %v654_v30, %v638_v28  ;;  %v461_v22 = vpop.permute.xlu1 %460 }
  0xb0   : > { %v565_v3 = vmul.f32 %v1128_v40, %v490_v46  ;;  %v591_v4 = vmul.f32 %v1130_v41, %v537_v23  ;;  %v592_v57 = vmul.f32 %v1132_v42, %v538_v47  ;;  %v639_v58 = vmul.f32 %v1126_v39, %v537_v23 }
  0xb1   : > { %621 = vst [vmem:[%s1271_s26 + $0x20] sm:$0xff] %v605_v50  ;;  %622 = vst [vmem:[%s1271_s26 + $0x28] sm:$0xff] %v606_v51  ;;  %v640_v59 = vmul.f32 %v1128_v40, %v538_v47  ;;  %v655_v60 = vmul.f32 %v1130_v41, %v489_v29  ;;  %v656_v5 = vmul.f32 %v1132_v42, %v490_v46 }
  0xb2   : > { %685 = vst [vmem:[%s1281_s29 + $0x20] sm:$0xff] %v669_v52  ;;  %686 = vst [vmem:[%s1281_s29 + $0x28] sm:$0xff] %v670_v53  ;;  %v607_v7 = vsub.f32 %v564_v2, %v591_v4  ;;  %v608_v9 = vsub.f32 %v565_v3, %v592_v57  ;;  %v475_v10 = vmul.f32 %v453_v63, %v1166_v56  ;;  %v465_v52 = vpop.permute.xlu0 %464 }
  0xb3   : > { %v476_v11 = vmul.f32 %v453_v63, %v1181_v61  ;;  %v671_v12 = vadd.f32 %v655_v60, %v639_v58  ;;  %v672_v13 = vadd.f32 %v656_v5, %v640_v59  ;;  %v523_v34 = vmul.f32 %v453_v63, %v1160_v54  ;;  %v1471_v58 = vld [vmem:[#allocation7_spill] sm:$0xff]  ;;  %v1472_v60 = vld [vmem:[#allocation12_spill] sm:$0xff] }
  0xb4   : > { %v524_v35 = vmul.f32 %v453_v63, %v1163_v55  ;;  %623 = vst [vmem:[%s1271_s26 + $0x30] sm:$0xff] %v607_v7  ;;  %624 = vst [vmem:[%s1271_s26 + $0x38] sm:$0xff] %v608_v9  ;;  %v491_v62 = vsub.f32 %v1222_v20, %v475_v10  ;;  %v477_v8 = vmul.f32 %v457_v6, %v1150_v48  ;;  %v1474_v9 = vld [vmem:[#allocation18_spill] sm:$0xff] }
  0xb5   : > { %v492_v1 = vsub.f32 %v1225_v21, %v476_v11  ;;  %v478_v33 = vmul.f32 %v457_v6, %v1153_v49  ;;  %687 = vst [vmem:[%s1281_s29 + $0x30] sm:$0xff] %v671_v12  ;;  %688 = vst [vmem:[%s1281_s29 + $0x38] sm:$0xff] %v672_v13  ;;  %v539_v56 = vadd.f32 %v523_v34, %v1228_v26  ;;  %v1475_v11 = vld [vmem:[#allocation5_spill] sm:$0xff]  ;;  %v1476_v13 = vld [vmem:[#allocation6_spill] sm:$0xff] }
  0xb6   : > { %v540_v61 = vadd.f32 %v524_v35, %v1231_v27  ;;  %v525_v54 = vmul.f32 %v457_v6, %v1124_v38  ;;  %v526_v55 = vmul.f32 %v457_v6, %v1466_v32  ;;  %v566_v36 = vmul.f32 %v1126_v39, %v491_v62  ;;  %v1467_v27 = vld [vmem:[#allocation8_spill] sm:$0xff]  ;;  %v1473_v6 = vld [vmem:[#allocation17_spill] sm:$0xff] }
  0xb7   : > { %v567_v20 = vmul.f32 %v1128_v40, %v492_v1  ;;  %v657_v21 = vmul.f32 %v1130_v41, %v491_v62  ;;  %v658_v48 = vmul.f32 %v1132_v42, %v492_v1  ;;  %v593_v49 = vmul.f32 %v1130_v41, %v539_v56  ;;  %v1478_v35 = vld [vmem:[#allocation20_spill] sm:$0xff]  ;;  %v1479_v1 = vld [vmem:[#allocation3_spill] sm:$0xff] }
  0xb8   : > { %v594_v37 = vmul.f32 %v1132_v42, %v540_v61  ;;  %v641_v26 = vmul.f32 %v1126_v39, %v539_v56  ;;  %v642_v38 = vmul.f32 %v1128_v40, %v540_v61  ;;  %v493_v24 = vsub.f32 %v1467_v27, %v477_v8  ;;  %v1483_v27 = vld [vmem:[#allocation15_spill] sm:$0xff] }
  0xb9   : > { %v494_v18 = vsub.f32 %v1468_v0, %v478_v33  ;;  %v541_v16 = vadd.f32 %v525_v54, %v1469_v19  ;;  %v542_v25 = vadd.f32 %v526_v55, %v1470_v17  ;;  %v609_v43 = vsub.f32 %v566_v36, %v593_v49  ;;  %v1480_v33 = vld [vmem:[#allocation4_spill] sm:$0xff]  ;;  %v1481_v49 = vld [vmem:[#allocation13_spill] sm:$0xff] }
  0xba   : > { %v610_v44 = vsub.f32 %v567_v20, %v594_v37  ;;  %v673_v30 = vadd.f32 %v657_v21, %v641_v26  ;;  %v674_v31 = vadd.f32 %v658_v48, %v642_v38  ;;  %v568_v45 = vmul.f32 %v1126_v39, %v493_v24  ;;  %v1482_v26 = vld [vmem:[#allocation14_spill] sm:$0xff]  ;;  %v1484_v0 = vld [vmem:[#allocation16_spill] sm:$0xff] }
  0xbb   : > { %v569_v28 = vmul.f32 %v1128_v40, %v494_v18  ;;  %v595_v29 = vmul.f32 %v1130_v41, %v541_v16  ;;  %v596_v46 = vmul.f32 %v1132_v42, %v542_v25  ;;  %625 = vst [vmem:[%s1271_s26 + $0x40] sm:$0xff] %v609_v43  ;;  %v643_v23 = vmul.f32 %v1126_v39, %v541_v16 }
  0xbc   : > { %626 = vst [vmem:[%s1271_s26 + $0x48] sm:$0xff] %v610_v44  ;;  %689 = vst [vmem:[%s1281_s29 + $0x40] sm:$0xff] %v673_v30  ;;  %v644_v47 = vmul.f32 %v1128_v40, %v542_v25  ;;  %v659_v50 = vmul.f32 %v1130_v41, %v493_v24  ;;  %v660_v51 = vmul.f32 %v1132_v42, %v494_v18 }
  0xbd   : > { %690 = vst [vmem:[%s1281_s29 + $0x48] sm:$0xff] %v674_v31  ;;  %v611_v53 = vsub.f32 %v568_v45, %v595_v29  ;;  %v612_v63 = vsub.f32 %v569_v28, %v596_v46  ;;  %v479_v2 = vmul.f32 %v461_v22, %v1216_v14  ;;  %v480_v3 = vmul.f32 %v461_v22, %v1219_v15  ;;  %v1477_v14 = vld [vmem:[#allocation19_spill] sm:$0xff] }
  0xbe   : > { %v675_v4 = vadd.f32 %v659_v50, %v643_v23  ;;  %v676_v57 = vadd.f32 %v660_v51, %v644_v47  ;;  %v527_v59 = vmul.f32 %v461_v22, %v1471_v58  ;;  %v528_v5 = vmul.f32 %v461_v22, %v1472_v60 }
  0xbf   : > { %627 = vst [vmem:[%s1271_s26 + $0x50] sm:$0xff] %v611_v53  ;;  %628 = vst [vmem:[%s1271_s26 + $0x58] sm:$0xff] %v612_v63  ;;  %v495_v7 = vsub.f32 %v1473_v6, %v479_v2  ;;  %v496_v10 = vsub.f32 %v1474_v9, %v480_v3  ;;  %v481_v12 = vmul.f32 %v465_v52, %v1475_v11 }
  0xc0   : > { %v482_v34 = vmul.f32 %v465_v52, %v1476_v13  ;;  %691 = vst [vmem:[%s1281_s29 + $0x50] sm:$0xff] %v675_v4  ;;  %692 = vst [vmem:[%s1281_s29 + $0x58] sm:$0xff] %v676_v57  ;;  %v543_v15 = vadd.f32 %v527_v59, %v1477_v14  ;;  %v544_v62 = vadd.f32 %v528_v5, %v1478_v35 }
  0xc1   : > { %v529_v8 = vmul.f32 %v465_v52, %v1479_v1  ;;  %v530_v56 = vmul.f32 %v465_v52, %v1480_v33  ;;  %v570_v61 = vmul.f32 %v1126_v39, %v495_v7  ;;  %v571_v54 = vmul.f32 %v1128_v40, %v496_v10 }
  0xc2   : > { %v661_v32 = vmul.f32 %v1130_v41, %v495_v7  ;;  %v662_v55 = vmul.f32 %v1132_v42, %v496_v10  ;;  %v597_v36 = vmul.f32 %v1130_v41, %v543_v15  ;;  %v598_v20 = vmul.f32 %v1132_v42, %v544_v62 }
  0xc3   : > { %v645_v21 = vmul.f32 %v1126_v39, %v543_v15  ;;  %v646_v48 = vmul.f32 %v1128_v40, %v544_v62  ;;  %v497_v37 = vsub.f32 %v1481_v49, %v481_v12  ;;  %v498_v38 = vsub.f32 %v1482_v26, %v482_v34 }
  0xc4   : > { %v545_v24 = vadd.f32 %v529_v8, %v1483_v27  ;;  %v546_v18 = vadd.f32 %v530_v56, %v1484_v0  ;;  %v613_v19 = vsub.f32 %v570_v61, %v597_v36  ;;  %v614_v16 = vsub.f32 %v571_v54, %v598_v20 }
  0xc5   : > { %v677_v17 = vadd.f32 %v661_v32, %v645_v21  ;;  %v678_v25 = vadd.f32 %v662_v55, %v646_v48  ;;  %v572_v43 = vmul.f32 %v1126_v39, %v497_v37  ;;  %v573_v44 = vmul.f32 %v1128_v40, %v498_v38 }
  0xc6   : > { %v599_v30 = vmul.f32 %v1130_v41, %v545_v24  ;;  %v600_v31 = vmul.f32 %v1132_v42, %v546_v18  ;;  %629 = vst [vmem:[%s1271_s26 + $0x60] sm:$0xff] %v613_v19  ;;  %630 = vst [vmem:[%s1271_s26 + $0x68] sm:$0xff] %v614_v16  ;;  %v647_v22 = vmul.f32 %v1126_v39, %v545_v24 }
  0xc7   : > { %693 = vst [vmem:[%s1281_s29 + $0x60] sm:$0xff] %v677_v17  ;;  %694 = vst [vmem:[%s1281_s29 + $0x68] sm:$0xff] %v678_v25  ;;  %v648_v45 = vmul.f32 %v1128_v40, %v546_v18  ;;  %v663_v28 = vmul.f32 %v1130_v41, %v497_v37  ;;  %v664_v29 = vmul.f32 %v1132_v42, %v498_v38 }
  0xc8   : > { %v615_v46 = vsub.f32 %v572_v43, %v599_v30  ;;  %v616_v23 = vsub.f32 %v573_v44, %v600_v31 }
  0xc9   : > { %v679_v47 = vadd.f32 %v663_v28, %v647_v22  ;;  %v680_v50 = vadd.f32 %v664_v29, %v648_v45 }
  0xca   : > { %631 = vst [vmem:[%s1271_s26 + $0x70] sm:$0xff] %v615_v46  ;;  %632 = vst [vmem:[%s1271_s26 + $0x78] sm:$0xff] %v616_v23 }
  0xcb   : > { %695 = vst [vmem:[%s1281_s29 + $0x70] sm:$0xff] %v679_v47  ;;  %696 = vst [vmem:[%s1281_s29 + $0x78] sm:$0xff] %v680_v50 }
  0xcc PF: > { %s16_s22 = sadd.s32 1, %s984_s22   ;;  %s1485_s18 = smov %s976_s20 }
  0xcd   : > { %p13_p7 = scmp.ge.s32.totalorder %s16_s22, 10   ;;  %s1486_s19 = smov %s980_s21 }
  0xce   : > { %s1487_s20 = smov %s1490_s23  ;;  %s1488_s21 = smov %s1494_s24 }
  0xcf   :  { %15 = sbr.rel (!%p13_p7) target bundleno = 3 (0x3), region = 83 }

</bundles_post_ra>
